<compile_context>
chip_gen: v7x
topology: tpu7x:2x2x1
jax: 0.10.0
libtpu: 0.0.40
codegen_flags: <defaults>
</compile_context>

<pallas_src>
import jax
import jax.numpy as jnp
import numpy as np
from jax.experimental import pallas as pl
from jax.experimental.pallas import tpu as pltpu

_LANE = 128
_MAX_ROWS_PER_BLOCK = 4096  # 4096 * 128 * 4 B = 2 MiB per f32 block


def _select_chain(x, thr, lvl, nb):
    """Compare/select chain shared by the kernel (thr/lvl are SMEM refs) and the
    jnp ragged-tail path (thr/lvl are arrays).

      thr[0]       = b[0]              (lower boundary, original order)
      thr[1..nb-2] = sorted_b[1..nb-2] (interior interval edges)
      thr[nb-1]    = b[-1]             (upper boundary, original order)
      lvl[0]  = -sum(a)
      lvl[k]  = sum_i a[i]*tanh(c[i]*(mid[k]-b[i])),  k = 1..nb-1
      lvl[nb] = +sum(a)
    """
    if nb >= 3:
        # Interior level index = 1 + #{j in [1, nb-2] : x >= bs[j]}.  The first
        # interior select doubles as the tile init (== jnp.full(lvl[1]) followed by
        # the k=2 select): identical semantics, one fewer VALU op per vreg.
        out = jnp.where(x >= thr[1], lvl[2], lvl[1])
        for k in range(3, nb):
            out = jnp.where(x >= thr[k - 1], lvl[k], out)
        # Lower-boundary override AFTER the chain (preserves exact PyTorch assignment
        # semantics even if b is not sorted).
        out = jnp.where(x <= thr[0], lvl[0], out)
    else:
        # nb <= 2: no interior thresholds; the lo boundary is the init.
        out = jnp.where(x <= thr[0], lvl[0], lvl[1])
    # Upper-boundary override last (matches the module's write order).
    return jnp.where(x > thr[nb - 1], lvl[nb], out)


def _make_kernel(nb: int):
    def kernel(thr_ref, lvl_ref, x_ref, o_ref):
        # Native-dtype load (f32 / bf16 / f16); chain runs in f32.
        x = x_ref[...].astype(jnp.float32)
        o_ref[...] = _select_chain(x, thr_ref, lvl_ref, nb)

    return kernel


def _run_pallas(thr, lvl, x2, nb):
    """Run the select-chain kernel over a lane-dense (rows, 128) slab."""
    rows, lane = x2.shape
    # Single full-array block for small inputs (no (8,128) constraint when block ==
    # full dims); otherwise 2 MiB blocks, ragged last block masked by Pallas.
    tile_r = rows if rows <= _MAX_ROWS_PER_BLOCK else _MAX_ROWS_PER_BLOCK
    grid = (pl.cdiv(rows, tile_r),)

    n_elems = rows * lane
    cost = pl.CostEstimate(
        flops=2 * (nb + 1) * n_elems,          # ~one compare+select pair per level
        transcendentals=0,
        bytes_accessed=n_elems * x2.dtype.itemsize + n_elems * 4,
    )

    return pl.pallas_call(
        _make_kernel(nb),
        out_shape=jax.ShapeDtypeStruct((rows, lane), jnp.float32),
        grid=grid,
        in_specs=[
            pl.BlockSpec(memory_space=pltpu.MemorySpace.SMEM),   # thresholds
            pl.BlockSpec(memory_space=pltpu.MemorySpace.SMEM),   # levels (LUT)
            pl.BlockSpec((tile_r, lane), lambda i: (i, 0)),      # x tile
        ],
        out_specs=pl.BlockSpec((tile_r, lane), lambda i: (i, 0)),
        compiler_params=pltpu.CompilerParams(
            dimension_semantics=("parallel",),
        ),
        cost_estimate=cost,
    )(thr, lvl, x2)


@jax.jit
def hard_quantization(x, a, b, c):
    """Pallas implementation of HardQuantizationLayer.forward (float32)."""
    nb = a.shape[0]  # num_code_words - 1
    orig_shape = x.shape

    # ---- Precompute the (nb+1)-entry step-level LUT outside the kernel (runs once) ----
    a32 = a.astype(jnp.float32)
    b32 = b.astype(jnp.float32)
    c32 = c.astype(jnp.float32)
    bs = jnp.sort(b32)
    sum_a = jnp.sum(a32)
    mid = (bs[:-1] + bs[1:]) * 0.5                                     # (nb-1,) midpoints
    levels = jnp.sum(
        a32[None, :] * jnp.tanh(c32[None, :] * (mid[:, None] - b32[None, :])),
        axis=1,
    )                                                                  # (nb-1,)
    lvl = jnp.concatenate([-sum_a[None], levels, sum_a[None]])         # (nb+1,)
    thr = jnp.concatenate([b32[0:1], bs[1:nb - 1], b32[nb - 1:nb]])    # (nb,)

    # ---- Lane-dense layout; keep the activation in its native (narrow) dtype ----
    xf = x.reshape(-1)
    if xf.dtype not in (jnp.float32, jnp.bfloat16, jnp.float16):
        xf = xf.astype(jnp.float32)   # ints / f64 etc. -> f32 before the kernel
    n = xf.shape[0]
    n_bulk = (n // _LANE) * _LANE

    if n_bulk == n:
        # Fast path (all typical conv activations, and the test shape): zero-copy view.
        out_flat = _run_pallas(thr, lvl, xf.reshape(-1, _LANE), nb).reshape(-1)
    elif n_bulk == 0:
        # Tiny (<128-element) input: the select chain in plain jnp is optimal.
        out_flat = _select_chain(xf.astype(jnp.float32), thr, lvl, nb)
    else:
        # Ragged: aligned bulk through the kernel, <128-element tail in plain jnp.
        # (No whole-tensor pad + slice round trip.)
        bulk = _run_pallas(thr, lvl, xf[:n_bulk].reshape(-1, _LANE), nb).reshape(-1)
        tail = _select_chain(xf[n_bulk:].astype(jnp.float32), thr, lvl, nb)
        out_flat = jnp.concatenate([bulk, tail])

    return out_flat.reshape(orig_shape)


def _reference(x, a, b, c):
    """Pure-numpy reference mirroring the PyTorch forward (float32)."""
    x = np.asarray(x, np.float32)
    a = np.asarray(a, np.float32)
    b = np.asarray(b, np.float32)
    c = np.asarray(c, np.float32)
    bs = np.sort(b)
    z = np.zeros_like(x)
    lo_mask = x <= b[0]
    hi_mask = x > b[-1]
    mid_mask = (~lo_mask) & (~hi_mask)
    z[lo_mask] = -a.sum()
    z[hi_mask] = a.sum()
    xm = x[mid_mask]
    ind = np.digitize(xm, bs)
    ind = np.clip(ind, 1, len(b) - 1)
    xq = (bs[ind - 1] + bs[ind]) / 2
    acc = np.zeros_like(xm)
    for i in range(len(b)):
        acc += a[i] * np.tanh(c[i] * (xq - b[i]))
    z[mid_mask] = acc
    return z


if __name__ == "__main__":
    # Module hyperparameters (deterministic, in-script):
    num_code_words = 8
    nb = num_code_words - 1  # length of a, b, c

    a = 0.5 + 0.1 * jnp.arange(nb, dtype=jnp.float32)        # (7,)
    b = jnp.linspace(-1.5, 1.5, nb).astype(jnp.float32)      # (7,) thresholds
    c = 2.0 + 0.2 * jnp.arange(nb, dtype=jnp.float32)        # (7,)

    # Input: NCHW like a PyTorch conv activation.
    key = jax.random.PRNGKey(0)
    x = jax.random.normal(key, (2, 4, 16, 16), dtype=jnp.float32)

    out = hard_quantization(x, a, b, c)
    out = jax.block_until_ready(out)

    ref = _reference(np.asarray(x), np.asarray(a), np.asarray(b), np.asarray(c))
    np.testing.assert_allclose(np.asarray(out), ref, rtol=1e-5, atol=1e-5)

    print("KERNEL_OK")
</pallas_src>

<mosaic_0001>
module attributes {stable_mosaic.version = 11 : i64} {
  func.func @kernel(%arg0: i32, %arg1: memref<7xf32, #tpu.memory_space<smem>>, %arg2: memref<8xf32, #tpu.memory_space<smem>>, %arg3: memref<16x128xf32, #tpu.memory_space<vmem>>, %arg4: memref<16x128xf32, #tpu.memory_space<vmem>>) attributes {dimension_semantics = [#tpu.dimension_semantics<parallel>], iteration_bounds = array<i64: 1>, scalar_prefetch = 0 : i64, scratch_operands = 0 : i64, tpu.core_type = #tpu.core_type<tc>, window_params = [{transform_indices = @transform_0, window_bounds = array<i64: 7>}, {transform_indices = @transform_1, window_bounds = array<i64: 8>}, {transform_indices = @transform_2, window_bounds = array<i64: 16, 128>}, {transform_indices = @transform_3, window_bounds = array<i64: 16, 128>}]} {
    %c0 = arith.constant 0 : index
    %c0_0 = arith.constant 0 : index
    %0 = vector.load %arg3[%c0, %c0_0] : memref<16x128xf32, #tpu.memory_space<vmem>>, vector<16x128xf32>
    %c1 = arith.constant 1 : index
    %1 = memref.load %arg1[%c1] : memref<7xf32, #tpu.memory_space<smem>>
    %2 = vector.broadcast %1 : f32 to vector<16x128xf32>
    %3 = arith.cmpf oge, %0, %2 : vector<16x128xf32>
    %c2 = arith.constant 2 : index
    %4 = memref.load %arg2[%c2] : memref<8xf32, #tpu.memory_space<smem>>
    %c1_1 = arith.constant 1 : index
    %5 = memref.load %arg2[%c1_1] : memref<8xf32, #tpu.memory_space<smem>>
    %6 = vector.broadcast %4 : f32 to vector<16x128xf32>
    %7 = vector.broadcast %5 : f32 to vector<16x128xf32>
    %8 = arith.select %3, %6, %7 : vector<16x128xi1>, vector<16x128xf32>
    %c2_2 = arith.constant 2 : index
    %9 = memref.load %arg1[%c2_2] : memref<7xf32, #tpu.memory_space<smem>>
    %10 = vector.broadcast %9 : f32 to vector<16x128xf32>
    %11 = arith.cmpf oge, %0, %10 : vector<16x128xf32>
    %c3 = arith.constant 3 : index
    %12 = memref.load %arg2[%c3] : memref<8xf32, #tpu.memory_space<smem>>
    %13 = vector.broadcast %12 : f32 to vector<16x128xf32>
    %14 = arith.select %11, %13, %8 : vector<16x128xi1>, vector<16x128xf32>
    %c3_3 = arith.constant 3 : index
    %15 = memref.load %arg1[%c3_3] : memref<7xf32, #tpu.memory_space<smem>>
    %16 = vector.broadcast %15 : f32 to vector<16x128xf32>
    %17 = arith.cmpf oge, %0, %16 : vector<16x128xf32>
    %c4 = arith.constant 4 : index
    %18 = memref.load %arg2[%c4] : memref<8xf32, #tpu.memory_space<smem>>
    %19 = vector.broadcast %18 : f32 to vector<16x128xf32>
    %20 = arith.select %17, %19, %14 : vector<16x128xi1>, vector<16x128xf32>
    %c4_4 = arith.constant 4 : index
    %21 = memref.load %arg1[%c4_4] : memref<7xf32, #tpu.memory_space<smem>>
    %22 = vector.broadcast %21 : f32 to vector<16x128xf32>
    %23 = arith.cmpf oge, %0, %22 : vector<16x128xf32>
    %c5 = arith.constant 5 : index
    %24 = memref.load %arg2[%c5] : memref<8xf32, #tpu.memory_space<smem>>
    %25 = vector.broadcast %24 : f32 to vector<16x128xf32>
    %26 = arith.select %23, %25, %20 : vector<16x128xi1>, vector<16x128xf32>
    %c5_5 = arith.constant 5 : index
    %27 = memref.load %arg1[%c5_5] : memref<7xf32, #tpu.memory_space<smem>>
    %28 = vector.broadcast %27 : f32 to vector<16x128xf32>
    %29 = arith.cmpf oge, %0, %28 : vector<16x128xf32>
    %c6 = arith.constant 6 : index
    %30 = memref.load %arg2[%c6] : memref<8xf32, #tpu.memory_space<smem>>
    %31 = vector.broadcast %30 : f32 to vector<16x128xf32>
    %32 = arith.select %29, %31, %26 : vector<16x128xi1>, vector<16x128xf32>
    %c0_6 = arith.constant 0 : index
    %33 = memref.load %arg1[%c0_6] : memref<7xf32, #tpu.memory_space<smem>>
    %34 = vector.broadcast %33 : f32 to vector<16x128xf32>
    %35 = arith.cmpf ole, %0, %34 : vector<16x128xf32>
    %c0_7 = arith.constant 0 : index
    %36 = memref.load %arg2[%c0_7] : memref<8xf32, #tpu.memory_space<smem>>
    %37 = vector.broadcast %36 : f32 to vector<16x128xf32>
    %38 = arith.select %35, %37, %32 : vector<16x128xi1>, vector<16x128xf32>
    %c6_8 = arith.constant 6 : index
    %39 = memref.load %arg1[%c6_8] : memref<7xf32, #tpu.memory_space<smem>>
    %40 = vector.broadcast %39 : f32 to vector<16x128xf32>
    %41 = arith.cmpf ogt, %0, %40 : vector<16x128xf32>
    %c7 = arith.constant 7 : index
    %42 = memref.load %arg2[%c7] : memref<8xf32, #tpu.memory_space<smem>>
    %43 = vector.broadcast %42 : f32 to vector<16x128xf32>
    %44 = arith.select %41, %43, %38 : vector<16x128xi1>, vector<16x128xf32>
    %c0_9 = arith.constant 0 : index
    %c0_10 = arith.constant 0 : index
    %45 = vector.load %arg4[%c0_9, %c0_10] : memref<16x128xf32, #tpu.memory_space<vmem>>, vector<16x128xf32>
    tpu.vector_store %arg4[%c0_9, %c0_10], %44 {strides = array<i32>} : memref<16x128xf32, #tpu.memory_space<vmem>>, vector<16x128xf32>,
    return
  }
  func.func @transform_0(%arg0: i32) -> i32 {
    %c0_i32 = arith.constant 0 : i32
    %c0_i32_0 = arith.constant 0 : i32
    return %c0_i32 : i32
  }
  func.func @transform_1(%arg0: i32) -> i32 {
    %c0_i32 = arith.constant 0 : i32
    %c0_i32_0 = arith.constant 0 : i32
    return %c0_i32 : i32
  }
  func.func @transform_2(%arg0: i32) -> (i32, i32) {
    %c0_i32 = arith.constant 0 : i32
    %c0_i32_0 = arith.constant 0 : i32
    return %arg0, %c0_i32 : i32, i32
  }
  func.func @transform_3(%arg0: i32) -> (i32, i32) {
    %c0_i32 = arith.constant 0 : i32
    %c0_i32_0 = arith.constant 0 : i32
    return %arg0, %c0_i32 : i32, i32
  }
}

</mosaic_0001>

<bundles_post_ra>
// kernel: hard_quantization.1
= control target key start
LH: loop header
LB: loop body
LE: loop exit
PB: predicated region body
PF: predicated region fallthrough
CT: control target
= control target key end

     0   :  { %8 = vsyncpa [#allocation3], 0  ;;  %s238_s0 = inlined_call_operand.vmem [shape: f32[7], index: 0, kind: input, shape index: {}]   ;;  %s239_s1 = inlined_call_operand.vmem [shape: f32[8], index: 1, kind: input, shape index: {}]   ;;  %s240_s2 = inlined_call_operand.vmem [shape: f32[16,128], index: 2, kind: input, shape index: {}]   ;;  %s241_s3 = inlined_call_operand.vmem [shape: f32[16,128], index: 3, kind: output, shape index: {}]  }
   0x1   :  { %s16_s14 = sshll.u32 %s238_s0, 4  ;;  %s17_s14 = int_to_ptr.vmem [resolvable:$true] %s16_s14 }
   0x2   :  { %9 = vsyncpa [#allocation5], 0  ;;  %s26_s17 = sshll.u32 %s239_s1, 4  ;;  %s122_s18 = scalar_lea.vmem %s17_s14, 16  ;;  %s27_s17 = int_to_ptr.vmem [resolvable:$true] %s26_s17 }
   0x3   :  { %p123_p0 = scmp.ne.s32.totalorder %s17_s14, %s122_s18  ;;  %p127_p1 = scmp.lt.s32.totalorder %s17_s14, %s17_s14 }
   0x4   :  { %p128_p2 = scmp.lt.s32.totalorder %s122_s18, %s122_s18 }
   0x6   :  { %p129_p3 = por %p128_p2, %p127_p1 }
   0x8   :  { %p130_p4 = pnand %p129_p3, %p123_p0 }
   0xa   :  { %133 = shalt.err (!%p130_p4)
}
   0xb   :  { %s150_s19 = smov [#allocation2]   ;;  %s134_s20 = scalar_lea.vmem %s27_s17, 16 }
   0xc   :  { %19 = dma.vmem_to_smem %s17_s14, 16, %s150_s19, [#allocation3]  }
   0xd   :  { %p135_p5 = scmp.ne.s32.totalorder %s27_s17, %s134_s20  ;;  %p139_p6 = scmp.lt.s32.totalorder %s27_s17, %s27_s17 }
   0xe   :  { %p140_p7 = scmp.lt.s32.totalorder %s134_s20, %s134_s20 }
  0x10   :  { %p141_p8 = por %p140_p7, %p139_p6 }
  0x12   :  { %p142_p9 = pnand %p141_p8, %p135_p5 }
  0x14   :  { %145 = shalt.err (!%p142_p9)
}
  0x15   :  { %s151_s0 = smov [#allocation4]  }
  0x16   :  { %29 = dma.vmem_to_smem %s27_s17, 16, %s151_s0, [#allocation5]  }
  0x17   :  { %146 = dma.done.wait [#allocation3], 16  }
  0x18   :  { %147 = vsyncadd [#allocation3], 4294967280 }
  0x19   :  { %148 = dma.done.wait [#allocation5], 16  }
  0x1a   :  { %149 = vsyncadd [#allocation5], 4294967280 }
  0x1b   :  { %38 = sfence }
  0x1c   :  { %s107_s1 = sld [smem:[#allocation2 + $0x1]]  ;;  %s178_s21 = sld [smem:[#allocation4 + $0x2]]  ;;  %v39_v0 = vld [vmem:[%s240_s2] sm:$0xff]  ;;  %v40_v1 = vld [vmem:[%s240_s2 + $0x8] sm:$0xff] }
  0x1d   :  { %s180_s22 = sld [smem:[#allocation4 + $0x1]]  ;;  %s182_s23 = sld [smem:[#allocation2 + $0x2]] }
  0x1e   :  { %s184_s24 = sld [smem:[#allocation4 + $0x3]]  ;;  %s188_s26 = sld [smem:[#allocation4 + $0x4]] }
  0x1f   :  { %s186_s25 = sld [smem:[#allocation2 + $0x3]]  ;;  %s190_s27 = sld [smem:[#allocation2 + $0x4]] }
  0x20   :  { %s195_s30 = sld [smem:[#allocation4 + $0x5]]  ;;  %s202_s7 = sld [smem:[#allocation4 + $0x6]] }
  0x21   :  { %s197_s4 = sld [smem:[#allocation2 + $0x5]]  ;;  %s204_s8 = sld [smem:[#allocation2]] }
  0x22   :  { %v42_v2 = vstv %s107_s1  ;;  %v47_v3 = vstv %s178_s21  ;;  %s207_s9 = sld [smem:[#allocation4]]  ;;  %s209_s10 = sld [smem:[#allocation2 + $0x6]] }
  0x23   :  { %vm43_vm0 = vcmp.ge.f32.partialorder %v39_v0, %v42_v2  ;;  %v48_v4 = vstv %s180_s22  ;;  %v52_v5 = vstv %s182_s23  ;;  %s213_s11 = sld [smem:[#allocation4 + $0x7]]  ;;  %vm215_vm1 = vcmp.ge.f32.partialorder %v40_v1, %v42_v2 }
  0x24   :  { %v49_v7 = vsel %vm43_vm0, %v47_v3, %v48_v4  ;;  %vm53_vm2 = vcmp.ge.f32.partialorder %v39_v0, %v52_v5  ;;  %v56_v8 = vstv %s184_s24  ;;  %v64_v11 = vstv %s188_s26 }
  0x25   :  { %v60_v9 = vstv %s186_s25  ;;  %v57_v10 = vsel %vm53_vm2, %v56_v8, %v49_v7  ;;  %v68_v12 = vstv %s190_s27  ;;  %v50_v24 = vsel %vm215_vm1, %v47_v3, %v48_v4 }
  0x26   :  { %vm61_vm3 = vcmp.ge.f32.partialorder %v39_v0, %v60_v9  ;;  %vm69_vm4 = vcmp.ge.f32.partialorder %v39_v0, %v68_v12  ;;  %v72_v14 = vstv %s195_s30  ;;  %v80_v17 = vstv %s202_s7 }
  0x27   :  { %v65_v13 = vsel %vm61_vm3, %v64_v11, %v57_v10  ;;  %v76_v15 = vstv %s197_s4  ;;  %v84_v18 = vstv %s204_s8  ;;  %vm54_vm8 = vcmp.ge.f32.partialorder %v40_v1, %v52_v5 }
  0x28   :  { %v73_v16 = vsel %vm69_vm4, %v72_v14, %v65_v13  ;;  %vm77_vm5 = vcmp.ge.f32.partialorder %v39_v0, %v76_v15  ;;  %vm85_vm6 = vcmp.le.f32.partialorder %v39_v0, %v84_v18  ;;  %v88_v20 = vstv %s207_s9 }
  0x29   :  { %v81_v19 = vsel %vm77_vm5, %v80_v17, %v73_v16  ;;  %v92_v21 = vstv %s209_s10  ;;  %v96_v23 = vstv %s213_s11  ;;  %vm62_vm9 = vcmp.ge.f32.partialorder %v40_v1, %v60_v9 }
  0x2a   :  { %v89_v22 = vsel %vm85_vm6, %v88_v20, %v81_v19  ;;  %vm93_vm7 = vcmp.gt.f32.partialorder %v39_v0, %v92_v21  ;;  %vm70_vm10 = vcmp.ge.f32.partialorder %v40_v1, %v68_v12  ;;  %v58_v26 = vsel %vm54_vm8, %v56_v8, %v50_v24 }
  0x2b   :  { %v97_v25 = vsel %vm93_vm7, %v96_v23, %v89_v22  ;;  %vm78_vm11 = vcmp.ge.f32.partialorder %v40_v1, %v76_v15  ;;  %v66_v27 = vsel %vm62_vm9, %v64_v11, %v58_v26  ;;  %vm86_vm12 = vcmp.le.f32.partialorder %v40_v1, %v84_v18 }
  0x2c   :  { %99 = vst [vmem:[%s241_s3] sm:$0xff] %v97_v25  ;;  %v74_v28 = vsel %vm70_vm10, %v72_v14, %v66_v27  ;;  %vm94_vm13 = vcmp.gt.f32.partialorder %v40_v1, %v92_v21 }
  0x2d   :  { %v82_v29 = vsel %vm78_vm11, %v80_v17, %v74_v28 }
  0x2e   :  { %v90_v30 = vsel %vm86_vm12, %v88_v20, %v82_v29 }
  0x2f   :  { %v98_v31 = vsel %vm94_vm13, %v96_v23, %v90_v30 }
  0x30   :  { %100 = vst [vmem:[%s241_s3 + $0x8] sm:$0xff] %v98_v31 }
  0x31   :  { %105 = vsyncpa [#allocation3], 1 }
  0x32   :  { %106 = vsyncpa [#allocation5], 1 }

</bundles_post_ra>
